<compile_context>
chip_gen: v7x
topology: tpu7x:2x2x1
jax: 0.10.0
libtpu: 0.0.40
codegen_flags: <defaults>
</compile_context>

<pallas_src>
import functools

import jax
import jax.numpy as jnp
from jax.experimental import pallas as pl
from jax.experimental.pallas import tpu as pltpu

LANE = 128
MAX_BLOCK_V = 8192  # cap on the vocab tile width (multiple of 128)


def _cdiv(a, b):
    return (a + b - 1) // b


def _round_up(a, b):
    return _cdiv(a, b) * b


def _tree_reduce(fn, xs):
    """Pairwise (log-depth) reduce of a Python list of arrays."""
    xs = list(xs)
    while len(xs) > 1:
        nxt = [fn(xs[i], xs[i + 1]) for i in range(0, len(xs) - 1, 2)]
        if len(xs) % 2:
            nxt.append(xs[-1])
        xs = nxt
    return xs[0]


# ---------------------------------------------------------------------------
# Kernels
# ---------------------------------------------------------------------------
def _lse_stream_kernel(x_ref, lse_ref, m_sc, l_sc, *, vocab, block_v):
    """Streams the vocab axis with lane-parallel (block_r, 128) LSE accumulators."""
    k = pl.program_id(1)
    n_v = pl.num_programs(1)
    n_chunks = block_v // LANE

    @pl.when(k == 0)
    def _init():
        m_sc[...] = jnp.full(m_sc.shape, -jnp.inf, jnp.float32)
        l_sc[...] = jnp.zeros(l_sc.shape, jnp.float32)

    def chunk(c):
        v = x_ref[:, c * LANE:(c + 1) * LANE]          # static 128-lane slice
        return v if v.dtype == jnp.float32 else v.astype(jnp.float32)

    def accumulate(chunks):
        # Pass 1: per-lane running max (elementwise only, no cross-lane reduce).
        tile_max = _tree_reduce(jnp.maximum, chunks)
        m_prev = m_sc[...]
        m_new = jnp.maximum(m_prev, tile_max)
        # Pass 2: exp + per-lane sum (EUP + VPU; still no cross-lane reduce).
        s = jnp.exp(m_prev - m_new) * l_sc[...]
        s = s + _tree_reduce(jnp.add, [jnp.exp(c - m_new) for c in chunks])
        m_sc[...] = m_new
        l_sc[...] = s

    rem = vocab % block_v          # valid columns in the last vocab tile (0 => full)
    if rem == 0:
        # No padded columns anywhere: single unmasked path.
        accumulate([chunk(c) for c in range(n_chunks)])
    else:
        n_full = rem // LANE       # fully-valid 128-wide chunks in the last tile
        tail_w = rem % LANE        # width of the partial chunk (0 => none)

        @pl.when(k < n_v - 1)
        def _interior():           # fast path: no iota, no select
            accumulate([chunk(c) for c in range(n_chunks)])

        @pl.when(k == n_v - 1)
        def _last():               # mask only the padded tail, only on the last tile
            chunks = [chunk(c) for c in range(n_full)]
            if tail_w:
                lane = jax.lax.broadcasted_iota(jnp.int32, (1, LANE), 1)
                chunks.append(jnp.where(lane < tail_w, chunk(n_full), -jnp.inf))
            accumulate(chunks)

    @pl.when(k == n_v - 1)
    def _finalize():
        # The only cross-lane reductions: once per row block.
        m_lane = m_sc[...]
        m_row = jnp.max(m_lane, axis=-1, keepdims=True)
        l_row = jnp.sum(l_sc[...] * jnp.exp(m_lane - m_row), axis=-1, keepdims=True)
        lse_ref[...] = (m_row + jnp.log(l_row)).astype(lse_ref.dtype)


def _lse_simple_kernel(x_ref, lse_ref):
    """Whole-row logsumexp for small vocabularies that are not 128-multiples."""
    x = x_ref[...]
    if x.dtype != jnp.float32:
        x = x.astype(jnp.float32)
    m = jnp.max(x, axis=-1, keepdims=True)
    s = jnp.sum(jnp.exp(x - m), axis=-1, keepdims=True)
    lse_ref[...] = (m + jnp.log(s)).astype(lse_ref.dtype)


# ---------------------------------------------------------------------------
# Tiling / budget helpers
# ---------------------------------------------------------------------------
def _vmem_budget(itemsize):
    kind = ""
    try:
        kind = jax.devices()[0].device_kind.lower()
    except Exception:
        pass
    if ("v5" in kind) or ("v6" in kind):
        # 128 MiB physical VMEM: big tiles amortize the ~0.35us/grid-step overhead.
        tile_bytes, vmem_limit = 16 << 20, 64 << 20
    else:
        # v7x (64 MiB per TC) and unknown chips: stay conservative.
        tile_bytes, vmem_limit = 8 << 20, 40 << 20
    return max(8 * LANE, tile_bytes // itemsize), vmem_limit


def _choose_row_block(batch, block_v, tile_elems):
    if batch <= 8:
        return batch                                   # full dim (always legal)
    block_r = max(8, min(1024, (tile_elems // max(block_v, 1)) // 8 * 8))
    block_r = min(block_r, _round_up(batch, 8))
    if batch >= 16:
        # keep >= 2 row blocks so a 2-TC chip (v7x) can split the parallel axis
        block_r = min(block_r, _round_up(_cdiv(batch, 2), 8))
    # best-effort: prefer an even number of row blocks for balanced 2-TC sharding
    n_r = _cdiv(batch, block_r)
    if n_r > 2 and n_r % 2 == 1:
        alt = _round_up(_cdiv(batch, n_r + 1), 8)
        if alt >= 8:
            block_r = alt
    return block_r


def _pallas_row_lse(logits, block_v_cap):
    """Per-row logsumexp of `logits`, returned as a (B, 1) float32 array."""
    B, V = logits.shape
    tile_elems, vmem_limit = _vmem_budget(logits.dtype.itemsize)
    cost = pl.CostEstimate(flops=4 * B * V, transcendentals=B * V,
                           bytes_accessed=B * V * logits.dtype.itemsize + 4 * B)

    use_stream = (V % LANE == 0) or (V > block_v_cap)
    if not use_stream:
        # Small vocab that is not a multiple of 128: one whole-row tile, direct
        # reductions (cross-lane work still happens only once per row block).
        block_r = _choose_row_block(B, V, tile_elems // 2)
        return pl.pallas_call(
            _lse_simple_kernel,
            out_shape=jax.ShapeDtypeStruct((B, 1), jnp.float32),
            grid_spec=pltpu.PrefetchScalarGridSpec(
                num_scalar_prefetch=0,
                grid=(_cdiv(B, block_r),),
                in_specs=[pl.BlockSpec((block_r, V), lambda i: (i, 0))],
                out_specs=pl.BlockSpec((block_r, 1), lambda i: (i, 0)),
            ),
            compiler_params=pltpu.CompilerParams(
                dimension_semantics=("parallel",),
                vmem_limit_bytes=vmem_limit),
            cost_estimate=cost,
        )(logits)

    # Streamed-vocab path (lane-parallel online LSE).
    if V <= block_v_cap:
        block_v = V                                   # single tile (V % 128 == 0 here)
    else:
        base = min(block_v_cap, MAX_BLOCK_V) // LANE * LANE
        block_v = base
        # Prefer a multiple of 128 that divides V exactly (skips the tail mask),
        # but never drop below half of the budgeted tile width.
        for cand in range(base, base // 2 - 1, -LANE):
            if cand >= LANE and V % cand == 0:
                block_v = cand
                break
    n_v = _cdiv(V, block_v)
    block_r = _choose_row_block(B, block_v, tile_elems)
    n_r = _cdiv(B, block_r)

    return pl.pallas_call(
        functools.partial(_lse_stream_kernel, vocab=V, block_v=block_v),
        out_shape=jax.ShapeDtypeStruct((B, 1), jnp.float32),
        grid_spec=pltpu.PrefetchScalarGridSpec(
            num_scalar_prefetch=0,
            grid=(n_r, n_v),
            in_specs=[pl.BlockSpec((block_r, block_v), lambda i, k: (i, k))],
            out_specs=pl.BlockSpec((block_r, 1), lambda i, k: (i, 0)),
            scratch_shapes=[
                pltpu.VMEM((block_r, LANE), jnp.float32),   # running per-lane max
                pltpu.VMEM((block_r, LANE), jnp.float32),   # running per-lane sum
            ],
        ),
        compiler_params=pltpu.CompilerParams(
            dimension_semantics=("parallel", "arbitrary"),
            vmem_limit_bytes=vmem_limit),
        cost_estimate=cost,
    )(logits)


# ---------------------------------------------------------------------------
# Public wrapper
# ---------------------------------------------------------------------------
@functools.partial(jax.jit, static_argnames=("block_v_cap",))
def pallas_cross_entropy(logits, targets, *, block_v_cap=MAX_BLOCK_V):
    """loss = mean_b( logsumexp(logits[b, :]) - logits[b, targets[b]] )."""
    B, V = logits.shape
    lse = _pallas_row_lse(logits, block_v_cap)                       # (B, 1) f32
    # Target-logit gather kept out of the streaming kernel: B element reads in XLA.
    tgt = targets.astype(jnp.int32)[:, None]
    sel = jnp.take_along_axis(logits, tgt, axis=-1).astype(jnp.float32)
    return jnp.mean(lse - sel)


def _reference_ce(logits, targets):
    x = logits.astype(jnp.float32)
    m = jnp.max(x, axis=-1, keepdims=True)
    lse = jnp.squeeze(m, -1) + jnp.log(jnp.sum(jnp.exp(x - m), axis=-1))
    sel = jnp.take_along_axis(x, targets[:, None].astype(jnp.int32), axis=-1)[:, 0]
    return jnp.mean(lse - sel)


if __name__ == "__main__":
    key = jax.random.PRNGKey(0)

    # (batch, vocab, block_v_cap):
    #   small non-128 vocab (simple kernel) / multi row-block (simple kernel)
    #   128-multiple single-tile streamed / forced multi-tile streamed (full-chunk tail)
    #   large vocab with a partial (<128) tail chunk (masked last tile)
    cases = [
        (8, 32, MAX_BLOCK_V),
        (16, 160, MAX_BLOCK_V),
        (8, 2176, MAX_BLOCK_V),
        (8, 2176, 1024),
        (8, 10400, MAX_BLOCK_V),
    ]
    for B, V, cap in cases:
        kx, kt, key = jax.random.split(key, 3)
        logits = jax.random.normal(kx, (B, V), dtype=jnp.float32) * 3.0
        targets = jax.random.randint(kt, (B,), 0, V, dtype=jnp.int32)

        loss = jax.block_until_ready(
            pallas_cross_entropy(logits, targets, block_v_cap=cap))
        ref = _reference_ce(logits, targets)

        assert loss.shape == ()
        assert jnp.allclose(loss, ref, atol=5e-5, rtol=5e-5), (B, V, cap, loss, ref)

    # bf16 logits also work (kernel upcasts in-register; halves HBM traffic).
    kx, kt, key = jax.random.split(key, 3)
    logits_bf16 = (jax.random.normal(kx, (16, 2048), dtype=jnp.float32) * 3.0
                   ).astype(jnp.bfloat16)
    targets = jax.random.randint(kt, (16,), 0, 2048, dtype=jnp.int32)
    loss = jax.block_until_ready(pallas_cross_entropy(logits_bf16, targets))
    ref = _reference_ce(logits_bf16, targets)
    assert jnp.allclose(loss, ref, atol=1e-4, rtol=1e-4), (loss, ref)

    print("KERNEL_OK")
</pallas_src>

<mosaic_0001>
module attributes {stable_mosaic.version = 11 : i64} {
  func.func @_lse_simple_kernel(%arg0: i32, %arg1: memref<8x32xf32, #tpu.memory_space<vmem>>, %arg2: memref<8x1xf32, #tpu.memory_space<vmem>>) attributes {dimension_semantics = [#tpu.dimension_semantics<parallel>], iteration_bounds = array<i64: 1>, scalar_prefetch = 0 : i64, scratch_operands = 0 : i64, tpu.core_type = #tpu.core_type<tc>, window_params = [{transform_indices = @transform_0, window_bounds = array<i64: 8, 32>}, {transform_indices = @transform_1, window_bounds = array<i64: 8, 1>}]} {
    %c0 = arith.constant 0 : index
    %c0_0 = arith.constant 0 : index
    %0 = vector.load %arg1[%c0, %c0_0] : memref<8x32xf32, #tpu.memory_space<vmem>>, vector<8x32xf32>
    %cst = arith.constant dense<0xFF800000> : vector<8xf32>
    %1 = vector.multi_reduction <maximumf>, %0, %cst [1] : vector<8x32xf32> to vector<8xf32>
    %2 = vector.shape_cast %1 : vector<8xf32> to vector<8x1xf32>
    %3 = vector.broadcast %2 : vector<8x1xf32> to vector<8x32xf32>
    %4 = arith.subf %0, %3 : vector<8x32xf32>
    %5 = math.exp %4 : vector<8x32xf32>
    %cst_1 = arith.constant dense<0.000000e+00> : vector<8xf32>
    %6 = vector.multi_reduction <add>, %5, %cst_1 [1] : vector<8x32xf32> to vector<8xf32>
    %7 = vector.shape_cast %6 : vector<8xf32> to vector<8x1xf32>
    %8 = math.log %7 : vector<8x1xf32>
    %9 = arith.addf %2, %8 : vector<8x1xf32>
    %c0_2 = arith.constant 0 : index
    %c0_3 = arith.constant 0 : index
    %10 = vector.load %arg2[%c0_2, %c0_3] : memref<8x1xf32, #tpu.memory_space<vmem>>, vector<8x1xf32>
    tpu.vector_store %arg2[%c0_2, %c0_3], %9 {strides = array<i32>} : memref<8x1xf32, #tpu.memory_space<vmem>>, vector<8x1xf32>,
    return
  }
  func.func @transform_0(%arg0: i32) -> (i32, i32) {
    %c0_i32 = arith.constant 0 : i32
    %c0_i32_0 = arith.constant 0 : i32
    return %arg0, %c0_i32 : i32, i32
  }
  func.func @transform_1(%arg0: i32) -> (i32, i32) {
    %c0_i32 = arith.constant 0 : i32
    %c0_i32_0 = arith.constant 0 : i32
    return %arg0, %c0_i32 : i32, i32
  }
}

</mosaic_0001>

<bundles_post_ra>
// kernel: pallas_cross_entropy.1
= control target key start
LH: loop header
LB: loop body
LE: loop exit
PB: predicated region body
PF: predicated region fallthrough
CT: control target
= control target key end

     0   :  { %vm9_vm0 = vcmask 261120   ;;  %vm22_vm1 = vcmask 7168   ;;  %s48_s0 = inlined_call_operand.vmem [shape: f32[8,32], index: 0, kind: input, shape index: {}]   ;;  %s49_s1 = inlined_call_operand.vmem [shape: f32[8,1], index: 1, kind: output, shape index: {}]  }
   0x1   :  { %v8_v0 = vld [vmem:[%s48_s0] sm:$0xff] }
   0x2   :  { %v10_v1 = vsel %vm9_vm0, %v8_v0, -inf }
   0x3   :  { %11 = vmax.xlane.f32.xlu0 %v10_v1 }
  0x90   :  { %v12_v2 = vpop.xlane.xlu0 %11 }
  0x91   :  { %v13_v3 = vsub.f32 %v8_v0, %v12_v2 }
  0x93   :  { %v14_v4 = vmul.f32 1.442695, %v13_v3 }
  0x95   :  { %28 = vpow2.f32 %v14_v4 }
  0x9f   :  { %v29_v5 = vpop.eup %28 }
  0xa0   :  { %v16_v6 = vsel %vm9_vm0, %v29_v5, 0.0 }
  0xa1   :  { %17 = vadd.xlane.f32.xlu0 %v16_v6 }
 0x12e   :  { %v18_v7 = vpop.xlane.xlu0 %17 }
 0x12f   :  { %30 = vlog2.f32 %v18_v7 }
 0x139   :  { %v31_v8 = vpop.eup %30 }
 0x13a   :  { %v20_v9 = vmul.f32 0.6931472, %v31_v8 }
 0x13c   :  { %v21_v10 = vadd.f32 %v20_v9, %v12_v2 }
 0x13e   :  { %23 = vst.msk [vmem:[%s49_s1] sm:$0xff] %vm22_vm1, %v21_v10 }

</bundles_post_ra>
